<compile_context>
chip_gen: v7x
topology: tpu7x:2x2x1
jax: 0.10.0
libtpu: 0.0.40
codegen_flags: <defaults>
</compile_context>

<pallas_src>
import math

import jax
import jax.numpy as jnp
from jax import lax
from jax.experimental import pallas as pl
from jax.experimental.pallas import tpu as pltpu

LANE = 128                  # lane width; slab is (rows, 128)
ACC_ROWS = 64               # per-core resident accumulator rows (8 f32 vregs)
N_CORES = 2                 # leading "parallel" axis; both TCs on v7x, harmless on 1-TC chips
TARGET_TILE_BYTES = 4 * 1024 * 1024    # per-input, per-pipeline-buffer tile
VMEM_LIMIT_BYTES = 32 * 1024 * 1024    # 2 inputs x 2 buffers x 4 MiB = 16 MiB + headroom


def _cdiv(a, b):
    return (a + b - 1) // b


def _round_up(x, m):
    return _cdiv(x, m) * m


def _mse_sum(x_recon, x):
    """sum((x_recon - x)^2) over all elements via an HBM-streaming Pallas kernel."""
    assert x_recon.shape == x.shape, (x_recon.shape, x.shape)
    total = math.prod(x.shape)
    if total == 0:
        return jnp.float32(0.0)

    xr_flat = x_recon.reshape(-1)
    x_flat = x.reshape(-1)

    rows = total // LANE
    tail = total - rows * LANE

    tail_sum = jnp.float32(0.0)
    if tail:
        # Sub-128-element tail: tiny XLA reduction (fused, negligible traffic).
        tr = xr_flat[rows * LANE:].astype(jnp.float32)
        tx = x_flat[rows * LANE:].astype(jnp.float32)
        tail_sum = jnp.sum((tr - tx) ** 2)
    if rows == 0:
        return tail_sum

    if tail:
        # Only the lane-ragged case (total % 128 != 0) needs a prefix slice;
        # the common aligned case below is a free reshape (no copy).
        xr2 = xr_flat[: rows * LANE].reshape(rows, LANE)
        x2 = x_flat[: rows * LANE].reshape(rows, LANE)
    else:
        xr2 = xr_flat.reshape(rows, LANE)
        x2 = x_flat.reshape(rows, LANE)

    itemsize = max(x_recon.dtype.itemsize, x.dtype.itemsize)
    max_tile_rows = max(
        ACC_ROWS, (TARGET_TILE_BYTES // (LANE * itemsize)) // ACC_ROWS * ACC_ROWS)
    tile_rows = min(max_tile_rows, _round_up(rows, ACC_ROWS))  # mult of 64 (bf16-safe)
    n_chunks = tile_rows // ACC_ROWS
    n_blocks = _cdiv(rows, tile_rows)        # blocks actually present (last may be ragged)
    n_full_blocks = rows // tile_rows        # blocks with every row valid
    n_tiles = _cdiv(n_blocks, N_CORES)       # grid steps per core
    unroll = 4 if n_chunks % 4 == 0 else (2 if n_chunks % 2 == 0 else 1)

    def kernel(xr_ref, x_ref, out_ref):
        c = pl.program_id(0)
        i = pl.program_id(1)

        @pl.when(i == 0)
        def _():
            out_ref[...] = jnp.zeros_like(out_ref)

        b = c * n_tiles + i                  # nominal block id for this grid step

        def load_sq(j):
            off = pl.multiple_of(j * ACC_ROWS, ACC_ROWS)
            d = (xr_ref[pl.ds(off, ACC_ROWS), :].astype(jnp.float32)
                 - x_ref[pl.ds(off, ACC_ROWS), :].astype(jnp.float32))
            return off, d * d

        @pl.when(b < n_full_blocks)          # hot path: every row of the block is valid
        def _():
            def body(j, acc):
                _, sq = load_sq(j)
                return acc + sq
            acc = lax.fori_loop(0, n_chunks, body,
                                jnp.zeros((ACC_ROWS, LANE), jnp.float32),
                                unroll=unroll)
            out_ref[...] += acc

        @pl.when(b >= n_full_blocks)         # ragged last block / clamped duplicate (<=2 steps)
        def _():
            valid = rows - b * tile_rows     # rows still valid in this block (<=0 -> none)
            row_ids = lax.broadcasted_iota(jnp.int32, (ACC_ROWS, LANE), 0)

            def body(j, acc):
                off, sq = load_sq(j)
                return acc + jnp.where(row_ids < (valid - off), sq, 0.0)
            acc = lax.fori_loop(0, n_chunks, body,
                                jnp.zeros((ACC_ROWS, LANE), jnp.float32))
            out_ref[...] += acc

    # Clamp nominal block ids so every DMA window is in bounds; the clamped
    # duplicates are fully masked in-kernel and contribute zero.
    in_map = lambda c, i: (jnp.minimum(c * n_tiles + i, n_blocks - 1), 0)

    partials = pl.pallas_call(
        kernel,
        out_shape=jax.ShapeDtypeStruct((N_CORES * ACC_ROWS, LANE), jnp.float32),
        grid_spec=pltpu.PrefetchScalarGridSpec(
            num_scalar_prefetch=0,
            grid=(N_CORES, n_tiles),
            in_specs=[
                pl.BlockSpec((tile_rows, LANE), in_map),
                pl.BlockSpec((tile_rows, LANE), in_map),
            ],
            out_specs=pl.BlockSpec((ACC_ROWS, LANE), lambda c, i: (c, 0)),
        ),
        compiler_params=pltpu.CompilerParams(
            # TODO(synk): on v7x, verify via xprof that "parallel" splits this
            # axis across both TensorCores; if not, switch to pltpu.CORE_PARALLEL.
            dimension_semantics=("parallel", "arbitrary"),
            vmem_limit_bytes=VMEM_LIMIT_BYTES,
        ),
        cost_estimate=pl.CostEstimate(
            flops=3 * rows * LANE,
            transcendentals=0,
            bytes_accessed=rows * LANE * (x_recon.dtype.itemsize + x.dtype.itemsize)
            + N_CORES * ACC_ROWS * LANE * 4,
        ),
    )(xr2, x2)

    return jnp.sum(partials) + tail_sum     # final cross-lane reduce, once, in XLA


def custom_loss(x_recon, x, mu, logvar):
    """VAE loss for `Autoencoder`: sum-MSE reconstruction + KL divergence."""
    mu32 = mu.astype(jnp.float32)
    lv32 = logvar.astype(jnp.float32)
    kld = -0.5 * jnp.sum(1.0 + lv32 - mu32 * mu32 - jnp.exp(lv32))
    return _mse_sum(x_recon, x) + kld


def custom_loss_ref(x_recon, x, mu, logvar):
    xr = x_recon.astype(jnp.float32)
    xx = x.astype(jnp.float32)
    mse = jnp.sum((xr - xx) ** 2)
    kld = -0.5 * jnp.sum(1.0 + logvar - mu * mu - jnp.exp(logvar))
    return mse + kld


# TODO(synk): the Autoencoder's Linear+BatchNorm1d+ReLU encode/decode stacks and
# the training-mode reparameterize sampling are left to XLA; kernel scope is the
# VAE loss (MSE + KLD), as in the previously reviewed version.

if __name__ == "__main__":
    key = jax.random.PRNGKey(0)
    ks = jax.random.split(key, 8)

    LATENT = 32
    mu = jax.random.normal(ks[0], (2, LATENT), dtype=jnp.float32)
    logvar = 0.1 * jax.random.normal(ks[1], (2, LATENT), dtype=jnp.float32)

    def check(xr, x, rtol=1e-5, atol=1e-4):
        out = jax.block_until_ready(custom_loss(xr, x, mu, logvar))
        ref = custom_loss_ref(xr, x, mu, logvar)
        assert jnp.allclose(out, ref, rtol=rtol, atol=atol), (out, ref)

    # Small NCHW-like input (lane-aligned total: 2*4*16*16 = 2048) -> no copies.
    xr = jax.random.normal(ks[2], (2, 4, 16, 16), dtype=jnp.float32)
    x = jax.random.normal(ks[3], (2, 4, 16, 16), dtype=jnp.float32)
    check(xr, x)

    # Ragged total (2*3*17*19 = 1938, not a multiple of 128): exercises the
    # in-kernel masked edge block and the tiny XLA tail path.
    xr_odd = jax.random.normal(ks[4], (2, 3, 17, 19), dtype=jnp.float32)
    x_odd = jax.random.normal(ks[5], (2, 3, 17, 19), dtype=jnp.float32)
    check(xr_odd, x_odd)

    # Larger lane-aligned input (32*8*128*128 = 4.19M elements): exercises the
    # unmasked hot path, multi-tile accumulation per core, and both cores' blocks.
    xr_big = jax.random.normal(ks[6], (32, 8, 128, 128), dtype=jnp.float32)
    x_big = jax.random.normal(ks[7], (32, 8, 128, 128), dtype=jnp.float32)
    check(xr_big, x_big, rtol=1e-4, atol=1e-2)

    # bf16 streaming path: inputs stay bf16 in HBM, kernel accumulates in f32.
    check(xr_big.astype(jnp.bfloat16), x_big.astype(jnp.bfloat16),
          rtol=1e-4, atol=1e-2)

    print("KERNEL_OK")
</pallas_src>

<mosaic_0001>
module attributes {stable_mosaic.version = 11 : i64} {
  func.func @kernel(%arg0: i32, %arg1: i32, %arg2: memref<64x128xf32, #tpu.memory_space<vmem>>, %arg3: memref<64x128xf32, #tpu.memory_space<vmem>>, %arg4: memref<64x128xf32, #tpu.memory_space<vmem>>) attributes {dimension_semantics = [#tpu.dimension_semantics<parallel>, #tpu.dimension_semantics<arbitrary>], iteration_bounds = array<i64: 2, 1>, scalar_prefetch = 0 : i64, scratch_operands = 0 : i64, tpu.core_type = #tpu.core_type<tc>, window_params = [{transform_indices = @transform_0, window_bounds = array<i64: 64, 128>}, {transform_indices = @transform_1, window_bounds = array<i64: 64, 128>}, {transform_indices = @transform_2, window_bounds = array<i64: 64, 128>}]} {
    %c0_i32 = arith.constant 0 : i32
    %0 = arith.cmpi eq, %arg1, %c0_i32 : i32
    %1 = arith.extui %0 : i1 to i32
    %c0_i32_0 = arith.constant 0 : i32
    %2 = arith.cmpi ne, %1, %c0_i32_0 : i32
    scf.if %2 {
      %cst = arith.constant 0.000000e+00 : f32
      %11 = vector.broadcast %cst : f32 to vector<64x128xf32>
      %c0 = arith.constant 0 : index
      %c0_5 = arith.constant 0 : index
      %12 = vector.load %arg4[%c0, %c0_5] : memref<64x128xf32, #tpu.memory_space<vmem>>, vector<64x128xf32>
      tpu.vector_store %arg4[%c0, %c0_5], %11 {strides = array<i32>} : memref<64x128xf32, #tpu.memory_space<vmem>>, vector<64x128xf32>,
    } else {
    }
    %c1_i32 = arith.constant 1 : i32
    %3 = arith.muli %arg0, %c1_i32 : i32
    %4 = arith.addi %3, %arg1 : i32
    %c0_i32_1 = arith.constant 0 : i32
    %5 = arith.cmpi slt, %4, %c0_i32_1 : i32
    %6 = arith.extui %5 : i1 to i32
    %c0_i32_2 = arith.constant 0 : i32
    %7 = arith.cmpi ne, %6, %c0_i32_2 : i32
    scf.if %7 {
      %cst = arith.constant 0.000000e+00 : f32
      %11 = vector.broadcast %cst : f32 to vector<64x128xf32>
      %c0_i32_5 = arith.constant 0 : i32
      %c64_i32 = arith.constant 64 : i32
      %12 = arith.muli %c0_i32_5, %c64_i32 : i32
      %13 = tpu.assume_multiple %12, 64 : i32
      %14 = arith.index_cast %13 : i32 to index
      %c0 = arith.constant 0 : index
      %15 = vector.load %arg2[%14, %c0] : memref<64x128xf32, #tpu.memory_space<vmem>>, vector<64x128xf32>
      %16 = arith.index_cast %13 : i32 to index
      %c0_6 = arith.constant 0 : index
      %17 = vector.load %arg3[%16, %c0_6] : memref<64x128xf32, #tpu.memory_space<vmem>>, vector<64x128xf32>
      %18 = arith.subf %15, %17 : vector<64x128xf32>
      %19 = arith.mulf %18, %18 : vector<64x128xf32>
      %20 = arith.addf %11, %19 : vector<64x128xf32>
      %c1_i32_7 = arith.constant 1 : i32
      %c0_8 = arith.constant 0 : index
      %c0_9 = arith.constant 0 : index
      %21 = vector.load %arg4[%c0_8, %c0_9] : memref<64x128xf32, #tpu.memory_space<vmem>>, vector<64x128xf32>
      %22 = arith.addf %21, %20 : vector<64x128xf32>
      %c0_10 = arith.constant 0 : index
      %c0_11 = arith.constant 0 : index
      %23 = vector.load %arg4[%c0_10, %c0_11] : memref<64x128xf32, #tpu.memory_space<vmem>>, vector<64x128xf32>
      tpu.vector_store %arg4[%c0_10, %c0_11], %22 {strides = array<i32>} : memref<64x128xf32, #tpu.memory_space<vmem>>, vector<64x128xf32>,
    } else {
    }
    %c0_i32_3 = arith.constant 0 : i32
    %8 = arith.cmpi sge, %4, %c0_i32_3 : i32
    %9 = arith.extui %8 : i1 to i32
    %c0_i32_4 = arith.constant 0 : i32
    %10 = arith.cmpi ne, %9, %c0_i32_4 : i32
    scf.if %10 {
      %c64_i32 = arith.constant 64 : i32
      %11 = arith.muli %4, %c64_i32 : i32
      %c16_i32 = arith.constant 16 : i32
      %12 = arith.subi %c16_i32, %11 : i32
      %13 = tpu.iota {dimensions = array<i32: 0>} : vector<64x128xi32>
      %cst = arith.constant 0.000000e+00 : f32
      %14 = vector.broadcast %cst : f32 to vector<64x128xf32>
      %c0_i32_5 = arith.constant 0 : i32
      %c64_i32_6 = arith.constant 64 : i32
      %15 = arith.muli %c0_i32_5, %c64_i32_6 : i32
      %16 = tpu.assume_multiple %15, 64 : i32
      %17 = arith.index_cast %16 : i32 to index
      %c0 = arith.constant 0 : index
      %18 = vector.load %arg2[%17, %c0] : memref<64x128xf32, #tpu.memory_space<vmem>>, vector<64x128xf32>
      %19 = arith.index_cast %16 : i32 to index
      %c0_7 = arith.constant 0 : index
      %20 = vector.load %arg3[%19, %c0_7] : memref<64x128xf32, #tpu.memory_space<vmem>>, vector<64x128xf32>
      %21 = arith.subf %18, %20 : vector<64x128xf32>
      %22 = arith.mulf %21, %21 : vector<64x128xf32>
      %23 = arith.subi %12, %16 : i32
      %24 = vector.broadcast %23 : i32 to vector<64x128xi32>
      %25 = arith.cmpi slt, %13, %24 : vector<64x128xi32>
      %cst_8 = arith.constant 0.000000e+00 : f32
      %26 = vector.broadcast %cst_8 : f32 to vector<64x128xf32>
      %27 = arith.select %25, %22, %26 : vector<64x128xi1>, vector<64x128xf32>
      %28 = arith.addf %14, %27 : vector<64x128xf32>
      %c1_i32_9 = arith.constant 1 : i32
      %c0_10 = arith.constant 0 : index
      %c0_11 = arith.constant 0 : index
      %29 = vector.load %arg4[%c0_10, %c0_11] : memref<64x128xf32, #tpu.memory_space<vmem>>, vector<64x128xf32>
      %30 = arith.addf %29, %28 : vector<64x128xf32>
      %c0_12 = arith.constant 0 : index
      %c0_13 = arith.constant 0 : index
      %31 = vector.load %arg4[%c0_12, %c0_13] : memref<64x128xf32, #tpu.memory_space<vmem>>, vector<64x128xf32>
      tpu.vector_store %arg4[%c0_12, %c0_13], %30 {strides = array<i32>} : memref<64x128xf32, #tpu.memory_space<vmem>>, vector<64x128xf32>,
    } else {
    }
    return
  }
  func.func @transform_0(%arg0: i32, %arg1: i32) -> (i32, i32) {
    %c1_i32 = arith.constant 1 : i32
    %0 = arith.muli %arg0, %c1_i32 : i32
    %1 = arith.addi %0, %arg1 : i32
    %c0_i32 = arith.constant 0 : i32
    %2 = arith.minsi %1, %c0_i32 : i32
    %c0_i32_0 = arith.constant 0 : i32
    %c0_i32_1 = arith.constant 0 : i32
    return %2, %c0_i32_0 : i32, i32
  }
  func.func @transform_1(%arg0: i32, %arg1: i32) -> (i32, i32) {
    %c1_i32 = arith.constant 1 : i32
    %0 = arith.muli %arg0, %c1_i32 : i32
    %1 = arith.addi %0, %arg1 : i32
    %c0_i32 = arith.constant 0 : i32
    %2 = arith.minsi %1, %c0_i32 : i32
    %c0_i32_0 = arith.constant 0 : i32
    %c0_i32_1 = arith.constant 0 : i32
    return %2, %c0_i32_0 : i32, i32
  }
  func.func @transform_2(%arg0: i32, %arg1: i32) -> (i32, i32) {
    %c0_i32 = arith.constant 0 : i32
    %c0_i32_0 = arith.constant 0 : i32
    return %arg0, %c0_i32 : i32, i32
  }
}

</mosaic_0001>

<bundles_post_ra>
// kernel: tpu_custom_call.1
= control target key start
LH: loop header
LB: loop body
LE: loop exit
PB: predicated region body
PF: predicated region fallthrough
CT: control target
= control target key end

     0   :  { %7 = vsyncpa [#allocation3], 0  ;;  %s1137_s0 = inlined_call_operand.hbm [shape: f32[16,128], index: 0, kind: input, shape index: {}]   ;;  %s1138_s1 = inlined_call_operand.hbm [shape: f32[16,128], index: 1, kind: input, shape index: {}]   ;;  %s1139_s2 = inlined_call_operand.hbm [shape: f32[128,128], index: 2, kind: output, shape index: {}]  }
   0x1   :  { %9 = vsyncpa [#allocation3 + $0x1], 0 }
   0x2   :  { %10 = vsyncpa [#allocation6], 0 }
   0x3   :  { %12 = vsyncpa [#allocation6 + $0x1], 0 }
   0x4   :  { %13 = vsyncpa [#allocation4], 0 }
   0x5   :  { %15 = vsyncpa [#allocation4 + $0x1], 0  ;;  %s864_s9 = smov 0   ;;  %s866_s10 = smov 0  }
   0x6   :  { %s868_s11 = smov 0   ;;  %s870_s12 = smov 0  }
   0x7   :  { %s872_s13 = smov 0   ;;  %s874_s14 = smov 0  }
   0x8   :  { %s876_s15 = smov 0   ;;  %s878_s16 = smov 0  }
   0x9 LB: > { %s549_s17 = sadd.s32 4294967295, %s837_s16   ;;  %s550_s18 = sadd.s32 4294967294, %s837_s16   ;;  %s837_s16 = sphi %s878_s16, %s21_s16   ;;  %s833_s15 = sphi %s876_s15, %s1151_s15   ;;  %s829_s14 = sphi %s874_s14, %s1150_s14   ;;  %s825_s13 = sphi %s872_s13, %s1127_s13   ;;  %s821_s12 = sphi %s870_s12, %s1149_s12   ;;  %s817_s11 = sphi %s868_s11, %s1148_s11   ;;  %s813_s10 = sphi %s866_s10, %s1147_s10   ;;  %s809_s9 = sphi %s864_s9, %s1146_s9  }
   0xa   : > { %s33_s19 = sadd.s32 1, %s833_s15  ;;  %p806_p1 = scmp.ne.s32.totalorder %s825_s13, 0 }
   0xb   : > { %p35_p0 = scmp.ge.s32.totalorder %s33_s19, 2  ;;  %p54_p2 = scmp.eq.s32.totalorder %s837_s16, 0 }
   0xc   : > { %p59_p3 = scmp.ne.s32.totalorder %s825_s13, %s821_s12  ;;  %p60_p5 = scmp.eq.s32.totalorder %s549_s17, 0 }
   0xd   : > { %s1153_s19 = smov (%p35_p0, %s33_s19), 0  ;;  %p910_p4 = por %p806_p1, %p54_p2 }
   0xe   : > { %p914_p6 = por %p60_p5, %p59_p3  ;;  %s101_s22 = ssub.s32 %s833_s15, %s1153_s19 }
   0xf   : > { %p102_p7 = scmp.eq.s32.totalorder %s101_s22, 0  ;;  %s104_s23 = sadd.s32 1, %s817_s11 }
  0x10   : > { %p114_p8 = scmp.ne.s32.totalorder %s817_s11, %s813_s10  ;;  %p115_p9 = scmp.eq.s32.totalorder %s549_s17, 1 }
  0x11   : > { %s922_s24 = scalar_select %p102_p7, %s817_s11, %s104_s23  }
  0x12   : > { %p120_p10 = scmp.ne.s32.totalorder %s813_s10, %s809_s9  ;;  %p121_p11 = scmp.eq.s32.totalorder %s550_s18, 1 }
  0x13   : > { %p928_p12 = por %p115_p9, %p114_p8  ;;  %p1140_p0 = scmp.ge.s32.totalorder %s837_s16, 2 }
  0x14   : > { %p932_p13 = por %p121_p11, %p120_p10 }
  0x15   : > { %137 = sbr.rel (%p1140_p0) target bundleno = 82 (0x52), region = 16 }
  0x1c   : > { %140 = sbr.rel (!%p910_p4) target bundleno = 55 (0x37), region = 20 }
  0x23   : > { %154 = vsyncadd [#allocation3], 768  ;;  %s839_s27 = smov [#allocation2]   ;;  %s670_s3 = scalar_lea.hbm %s1137_s0, 256 }
  0x24   : > { %s159_s28 = sshll.u32 %s839_s27, 4  ;;  %p671_p1 = scmp.ne.s32.totalorder %s1137_s0, %s670_s3  ;;  %s160_s28 = int_to_ptr.vmem [resolvable:$true] %s159_s28 }
  0x25   : > { %p676_p2 = scmp.lt.u32.totalorder %s670_s3, %s670_s3  ;;  %p678_p3 = scmp.lt.u32.totalorder %s670_s3, %s1137_s0 }
  0x27   : > { %p679_p5 = por %p678_p3, %p676_p2 }
  0x29   : > { %p680_p7 = pnand %p679_p5, %p671_p1 }
  0x2b   : > { %683 = shalt.err (!%p680_p7)
}
  0x2c   : > { %s684_s8 = scalar_lea.vmem %s160_s28, 256  ;;  %s690_s12 = scalar_lea.vmem %s160_s28, 2048 }
  0x2d   : > { %p685_p8 = scmp.ne.s32.totalorder %s160_s28, %s684_s8  ;;  %p691_p9 = scmp.lt.s32.totalorder %s160_s28, %s160_s28 }
  0x2e   : > { %p692_p10 = scmp.lt.s32.totalorder %s690_s12, %s684_s8 }
  0x30   : > { %p693_p11 = por %p692_p10, %p691_p9 }
  0x32   : > { %p694_p0 = pnand %p693_p11, %p685_p8 }
  0x34   : > { %697 = shalt.err (!%p694_p0)
}
  0x35   : > { %s840_s17 = smov 128   ;;  %s841_s18 = smov 8  }
  0x36   : > { %165 = dma.hbm_to_vmem [thread:$0]  %s1137_s0, 256, %s160_s28, [#allocation3], %s840_s17, %s840_s17, %s841_s18  }
  0x37 PF: > { %168 = sbr.rel (!%p910_p4) target bundleno = 82 (0x52), region = 24 }
  0x3e   : > { %182 = vsyncadd [#allocation6], 768  ;;  %s842_s27 = smov [#allocation5]   ;;  %s698_s4 = scalar_lea.hbm %s1138_s1, 256 }
  0x3f   : > { %s187_s29 = sshll.u32 %s842_s27, 4  ;;  %p699_p0 = scmp.ne.s32.totalorder %s1138_s1, %s698_s4  ;;  %s188_s29 = int_to_ptr.vmem [resolvable:$true] %s187_s29 }
  0x40   : > { %p704_p1 = scmp.lt.u32.totalorder %s698_s4, %s698_s4  ;;  %p706_p2 = scmp.lt.u32.totalorder %s698_s4, %s1138_s1 }
  0x42   : > { %p707_p3 = por %p706_p2, %p704_p1 }
  0x44   : > { %p708_p5 = pnand %p707_p3, %p699_p0 }
  0x46   : > { %711 = shalt.err (!%p708_p5)
}
  0x47   : > { %s712_s20 = scalar_lea.vmem %s188_s29, 256  ;;  %s718_s28 = scalar_lea.vmem %s188_s29, 2048 }
  0x48   : > { %p713_p4 = scmp.ne.s32.totalorder %s188_s29, %s712_s20  ;;  %p719_p7 = scmp.lt.s32.totalorder %s188_s29, %s188_s29 }
  0x49   : > { %p720_p8 = scmp.lt.s32.totalorder %s718_s28, %s712_s20 }
  0x4b   : > { %p721_p9 = por %p720_p8, %p719_p7 }
  0x4d   : > { %p722_p10 = pnand %p721_p9, %p713_p4 }
  0x4f   : > { %725 = shalt.err (!%p722_p10)
}
  0x50   : > { %s843_s12 = smov 128   ;;  %s844_s17 = smov 8  }
  0x51   : > { %193 = dma.hbm_to_vmem [thread:$0]  %s1138_s1, 256, %s188_s29, [#allocation6], %s843_s12, %s843_s12, %s844_s17  }
  0x52 PF: > { %p567_p11 = scmp.ge.s32.totalorder %s837_s16, 1  ;;  %p195_p0 = scmp.lt.s32.totalorder %s837_s16, 3 }
  0x54   : > { %p196_p1 = pnand %p567_p11, %p195_p0 }
  0x55   : > { %s201_s23 = sand.u32 (!%p196_p1), 1, %s825_s13  }
  0x56   : > { %199 = sbr.rel (%p196_p1) target bundleno = 158 (0x9e), region = 28  ;;  %s568_s27 = sshll.u32 (!%p196_p1), %s201_s23, 6 }
  0x57   : > { %s202_s30 = scalar_lea.sflag (!%p196_p1), [#allocation3], %s201_s23  ;;  %s970_s3 = scalar_lea.vmem (!%p196_p1), [#allocation2], %s568_s27 }
  0x5d   : > { %791 = dma.done.wait (%p914_p6), %s202_s30, 1024  }
  0x5e   : > { %793 = vsyncadd (%p914_p6), %s202_s30, 4294966272  ;;  %s211_s29 = scalar_lea.sflag [#allocation6], %s201_s23  ;;  %s976_s4 = scalar_lea.vmem [#allocation5], %s568_s27 }
  0x5f   : > { %795 = dma.done.wait (%p914_p6), %s211_s29, 1024  }
  0x60   : > { %797 = vsyncadd (%p914_p6), %s211_s29, 4294966272  ;;  %s237_s5 = sand.u32 1, %s813_s10   ;;  %v845_v0 = vmov 0.0   ;;  %p571_p6 = scmp.ge.s32.totalorder %s829_s14, 0 }
  0x61   : > { %s570_s6 = sshll.u32 %s237_s5, 6  ;;  %v270_v1 = vld [vmem:[%s970_s3] sm:$0xff] (!%p571_p6)  ;;  %v271_v4 = vld [vmem:[%s970_s3 + $0x8] sm:$0xff] (!%p571_p6)  ;;  %v272_v8 = vld [vmem:[%s970_s3 + $0x10] sm:$0xff] (!%p571_p6) }
  0x62   : > { %s985_s7 = scalar_lea.vmem [#allocation7], %s570_s6  ;;  %269 = sbr.rel (%p571_p6) target bundleno = 113 (0x71), region = 44  ;;  %v278_v2 = vld [vmem:[%s976_s4] sm:$0xff] (!%p571_p6)  ;;  %v279_v5 = vld [vmem:[%s976_s4 + $0x8] sm:$0xff] (!%p571_p6)  ;;  %v280_v9 = vld [vmem:[%s976_s4 + $0x10] sm:$0xff] (!%p571_p6) }
  0x63   : > { %257 = vst [vmem:[%s985_s7] sm:$0xff] %v845_v0  ;;  %258 = vst [vmem:[%s985_s7 + $0x8] sm:$0xff] %v845_v0  ;;  %v286_v3 = vsub.f32 (!%p571_p6), %v270_v1, %v278_v2  ;;  %v287_v7 = vsub.f32 (!%p571_p6), %v271_v4, %v279_v5  ;;  %v288_v12 = vsub.f32 (!%p571_p6), %v272_v8, %v280_v9  ;;  %v273_v13 = vld [vmem:[%s970_s3 + $0x18] sm:$0xff] (!%p571_p6)  ;;  %v274_v18 = vld [vmem:[%s970_s3 + $0x20] sm:$0xff] (!%p571_p6) }
  0x64   : > { %259 = vst [vmem:[%s985_s7 + $0x10] sm:$0xff] %v845_v0  ;;  %260 = vst [vmem:[%s985_s7 + $0x18] sm:$0xff] %v845_v0  ;;  %v281_v14 = vld [vmem:[%s976_s4 + $0x18] sm:$0xff] (!%p571_p6)  ;;  %v282_v19 = vld [vmem:[%s976_s4 + $0x20] sm:$0xff] (!%p571_p6) }
  0x65   : > { %261 = vst [vmem:[%s985_s7 + $0x20] sm:$0xff] %v845_v0  ;;  %262 = vst [vmem:[%s985_s7 + $0x28] sm:$0xff] %v845_v0  ;;  %v294_v10 = vmul.f32 (!%p571_p6), %v286_v3, %v286_v3  ;;  %v295_v15 = vmul.f32 (!%p571_p6), %v287_v7, %v287_v7  ;;  %v289_v17 = vsub.f32 (!%p571_p6), %v273_v13, %v281_v14  ;;  %v275_v24 = vld [vmem:[%s970_s3 + $0x28] sm:$0xff] (!%p571_p6)  ;;  %v276_v30 = vld [vmem:[%s970_s3 + $0x30] sm:$0xff] (!%p571_p6) }
  0x66   : > { %263 = vst [vmem:[%s985_s7 + $0x30] sm:$0xff] %v845_v0  ;;  %264 = vst [vmem:[%s985_s7 + $0x38] sm:$0xff] %v845_v0  ;;  %v296_v21 = vmul.f32 (!%p571_p6), %v288_v12, %v288_v12  ;;  %v290_v23 = vsub.f32 (!%p571_p6), %v274_v18, %v282_v19  ;;  %v283_v25 = vld [vmem:[%s976_s4 + $0x28] sm:$0xff] (!%p571_p6)  ;;  %v284_v31 = vld [vmem:[%s976_s4 + $0x30] sm:$0xff] (!%p571_p6) }
  0x67   : > { %v297_v27 = vmul.f32 (!%p571_p6), %v289_v17, %v289_v17  ;;  %v291_v29 = vsub.f32 (!%p571_p6), %v275_v24, %v283_v25  ;;  %v292_v35 = vsub.f32 (!%p571_p6), %v276_v30, %v284_v31  ;;  %v277_v36 = vld [vmem:[%s970_s3 + $0x38] sm:$0xff] (!%p571_p6) }
  0x68   : > { %v298_v33 = vmul.f32 (!%p571_p6), %v290_v23, %v290_v23  ;;  %v285_v37 = vld [vmem:[%s976_s4 + $0x38] sm:$0xff] (!%p571_p6) }
  0x69   : > { %v299_v39 = vmul.f32 %v291_v29, %v291_v29  ;;  %v293_v41 = vsub.f32 %v277_v36, %v285_v37  ;;  %v300_v43 = vmul.f32 %v292_v35, %v292_v35 }
  0x6a   : > { %v310_v6 = vld [vmem:[%s985_s7] sm:$0xff]  ;;  %v311_v11 = vld [vmem:[%s985_s7 + $0x8] sm:$0xff] }
  0x6b   : > { %v312_v16 = vld [vmem:[%s985_s7 + $0x10] sm:$0xff]  ;;  %v318_v20 = vadd.f32 %v310_v6, %v294_v10  ;;  %v313_v22 = vld [vmem:[%s985_s7 + $0x18] sm:$0xff]  ;;  %v319_v26 = vadd.f32 %v311_v11, %v295_v15  ;;  %v301_v46 = vmul.f32 %v293_v41, %v293_v41 }
  0x6c   : > { %v314_v28 = vld [vmem:[%s985_s7 + $0x20] sm:$0xff]  ;;  %v320_v32 = vadd.f32 %v312_v16, %v296_v21  ;;  %v315_v34 = vld [vmem:[%s985_s7 + $0x28] sm:$0xff]  ;;  %v321_v38 = vadd.f32 %v313_v22, %v297_v27 }
  0x6d   : > { %326 = vst [vmem:[%s985_s7] sm:$0xff] %v318_v20  ;;  %327 = vst [vmem:[%s985_s7 + $0x8] sm:$0xff] %v319_v26  ;;  %v316_v40 = vld [vmem:[%s985_s7 + $0x30] sm:$0xff]  ;;  %v322_v42 = vadd.f32 %v314_v28, %v298_v33  ;;  %v317_v44 = vld [vmem:[%s985_s7 + $0x38] sm:$0xff]  ;;  %v323_v45 = vadd.f32 %v315_v34, %v299_v39 }
  0x6e   : > { %328 = vst [vmem:[%s985_s7 + $0x10] sm:$0xff] %v320_v32  ;;  %329 = vst [vmem:[%s985_s7 + $0x18] sm:$0xff] %v321_v38  ;;  %v324_v47 = vadd.f32 %v316_v40, %v300_v43  ;;  %v325_v48 = vadd.f32 %v317_v44, %v301_v46 }
  0x6f   : > { %330 = vst [vmem:[%s985_s7 + $0x20] sm:$0xff] %v322_v42  ;;  %331 = vst [vmem:[%s985_s7 + $0x28] sm:$0xff] %v323_v45 }
  0x70   : > { %332 = vst [vmem:[%s985_s7 + $0x30] sm:$0xff] %v324_v47  ;;  %333 = vst [vmem:[%s985_s7 + $0x38] sm:$0xff] %v325_v48 }
  0x71 PF: > { %p572_p2 = scmp.lt.s32.totalorder %s829_s14, 0 }
  0x72   : > { %s573_s21 = sshll.u32 (!%p572_p2), %s829_s14, 6  ;;  %v340_v49 = vlaneseq (!%p572_p2)  ;;  %v349_v50 = vld [vmem:[%s970_s3] sm:$0xff] (!%p572_p2)  ;;  %v350_v53 = vld [vmem:[%s970_s3 + $0x8] sm:$0xff] (!%p572_p2)  ;;  %v351_v58 = vld [vmem:[%s970_s3 + $0x10] sm:$0xff] (!%p572_p2) }
  0x73   : > { %337 = sbr.rel (%p572_p2) target bundleno = 133 (0x85), region = 48  ;;  %v357_v51 = vld [vmem:[%s976_s4] sm:$0xff] (!%p572_p2)  ;;  %s339_s8 = ssub.s32 (!%p572_p2), 16, %s573_s21  ;;  %v358_v54 = vld [vmem:[%s976_s4 + $0x8] sm:$0xff] (!%p572_p2)  ;;  %v359_v59 = vld [vmem:[%s976_s4 + $0x10] sm:$0xff] (!%p572_p2) }
  0x74   : > { %v365_v52 = vsub.f32 (!%p572_p2), %v349_v50, %v357_v51  ;;  %v341_v55 = vshrl.u32 (!%p572_p2), %v340_v49, 7  ;;  %v1034_v56 = vstv (!%p572_p2), %s339_s8  ;;  %v366_v57 = vsub.f32 (!%p572_p2), %v350_v53, %v358_v54  ;;  %v407_v61 = vld [vmem:[%s985_s7] sm:$0xff] (!%p572_p2)  ;;  %v352_v63 = vld [vmem:[%s970_s3 + $0x18] sm:$0xff] (!%p572_p2)  ;;  %v408_v3 = vld [vmem:[%s985_s7 + $0x8] sm:$0xff] (!%p572_p2) }
  0x75   : > { %v367_v62 = vsub.f32 (!%p572_p2), %v351_v58, %v359_v59  ;;  %v360_v0 = vld [vmem:[%s976_s4 + $0x18] sm:$0xff] (!%p572_p2)  ;;  %v409_v7 = vld [vmem:[%s985_s7 + $0x10] sm:$0xff] (!%p572_p2)  ;;  %v353_v10 = vld [vmem:[%s970_s3 + $0x20] sm:$0xff] (!%p572_p2) }
  0x76   : > { %v373_v60 = vmul.f32 (!%p572_p2), %v365_v52, %v365_v52  ;;  %vm383_vm0 = vcmp.lt.s32.totalorder (!%p572_p2), %v341_v55, %v1034_v56  ;;  %v342_v1 = vadd.s32 (!%p572_p2), 8, %v341_v55  ;;  %v374_v2 = vmul.f32 (!%p572_p2), %v366_v57, %v366_v57  ;;  %v361_v11 = vld [vmem:[%s976_s4 + $0x20] sm:$0xff] (!%p572_p2)  ;;  %v354_v14 = vld [vmem:[%s970_s3 + $0x28] sm:$0xff] (!%p572_p2)  ;;  %v410_v19 = vld [vmem:[%s985_s7 + $0x18] sm:$0xff] (!%p572_p2) }
  0x77   : > { %v343_v4 = vadd.s32 (!%p572_p2), 16, %v341_v55  ;;  %v375_v6 = vmul.f32 (!%p572_p2), %v367_v62, %v367_v62  ;;  %v344_v8 = vadd.s32 (!%p572_p2), 24, %v341_v55  ;;  %v368_v9 = vsub.f32 (!%p572_p2), %v352_v63, %v360_v0  ;;  %v362_v15 = vld [vmem:[%s976_s4 + $0x28] sm:$0xff] (!%p572_p2)  ;;  %v355_v20 = vld [vmem:[%s970_s3 + $0x30] sm:$0xff] (!%p572_p2)  ;;  %v356_v25 = vld [vmem:[%s970_s3 + $0x38] sm:$0xff] (!%p572_p2) }
  0x78   : > { %v391_v5 = vsel (!%p572_p2), %vm383_vm0, %v373_v60, 0.0  ;;  %vm384_vm1 = vcmp.lt.s32.totalorder (!%p572_p2), %v342_v1, %v1034_v56  ;;  %v345_v13 = vadd.s32 (!%p572_p2), 32, %v341_v55  ;;  %v363_v21 = vld [vmem:[%s976_s4 + $0x30] sm:$0xff] (!%p572_p2)  ;;  %v369_v24 = vsub.f32 (!%p572_p2), %v353_v10, %v361_v11  ;;  %v364_v26 = vld [vmem:[%s976_s4 + $0x38] sm:$0xff] (!%p572_p2)  ;;  %v411_v33 = vld [vmem:[%s985_s7 + $0x20] sm:$0xff] (!%p572_p2) }
  0x79   : > { %v415_v12 = vadd.f32 (!%p572_p2), %v407_v61, %v391_v5  ;;  %vm385_vm2 = vcmp.lt.s32.totalorder (!%p572_p2), %v343_v4, %v1034_v56  ;;  %v392_v16 = vsel (!%p572_p2), %vm384_vm1, %v374_v2, 0.0  ;;  %v376_v18 = vmul.f32 (!%p572_p2), %v368_v9, %v368_v9  ;;  %v412_v37 = vld [vmem:[%s985_s7 + $0x28] sm:$0xff] (!%p572_p2)  ;;  %v413_v41 = vld [vmem:[%s985_s7 + $0x30] sm:$0xff] (!%p572_p2)  ;;  %v414_v45 = vld [vmem:[%s985_s7 + $0x38] sm:$0xff] (!%p572_p2) }
  0x7a   : > { %v393_v17 = vsel %vm385_vm2, %v375_v6, 0.0  ;;  %vm386_vm3 = vcmp.lt.s32.totalorder %v344_v8, %v1034_v56  ;;  %v416_v22 = vadd.f32 %v408_v3, %v392_v16  ;;  %vm387_vm4 = vcmp.lt.s32.totalorder %v345_v13, %v1034_v56 }
  0x7b   : > { %423 = vst [vmem:[%s985_s7] sm:$0xff] %v415_v12  ;;  %v417_v23 = vadd.f32 %v409_v7, %v393_v17  ;;  %v394_v27 = vsel %vm386_vm3, %v376_v18, 0.0  ;;  %v346_v28 = vadd.s32 40, %v341_v55  ;;  %v370_v29 = vsub.f32 %v354_v14, %v362_v15 }
  0x7c   : > { %v347_v30 = vadd.s32 48, %v341_v55  ;;  %424 = vst [vmem:[%s985_s7 + $0x8] sm:$0xff] %v416_v22  ;;  %v418_v31 = vadd.f32 %v410_v19, %v394_v27  ;;  %v377_v32 = vmul.f32 %v369_v24, %v369_v24  ;;  %v371_v34 = vsub.f32 %v355_v20, %v363_v21 }
  0x7d   : > { %425 = vst [vmem:[%s985_s7 + $0x10] sm:$0xff] %v417_v23  ;;  %v348_v35 = vadd.s32 56, %v341_v55  ;;  %v378_v36 = vmul.f32 %v370_v29, %v370_v29  ;;  %vm388_vm5 = vcmp.lt.s32.totalorder %v346_v28, %v1034_v56  ;;  %v372_v38 = vsub.f32 %v356_v25, %v364_v26 }
  0x7e   : > { %vm389_vm6 = vcmp.lt.s32.totalorder %v347_v30, %v1034_v56  ;;  %426 = vst [vmem:[%s985_s7 + $0x18] sm:$0xff] %v418_v31  ;;  %v395_v39 = vsel %vm387_vm4, %v377_v32, 0.0  ;;  %v379_v40 = vmul.f32 %v371_v34, %v371_v34 }
  0x7f   : > { %vm390_vm7 = vcmp.lt.s32.totalorder %v348_v35, %v1034_v56  ;;  %v419_v42 = vadd.f32 %v411_v33, %v395_v39  ;;  %v396_v43 = vsel %vm388_vm5, %v378_v36, 0.0  ;;  %v380_v44 = vmul.f32 %v372_v38, %v372_v38 }
  0x80   : > { %v420_v46 = vadd.f32 %v412_v37, %v396_v43  ;;  %v397_v47 = vsel %vm389_vm6, %v379_v40, 0.0 }
  0x81   : > { %427 = vst [vmem:[%s985_s7 + $0x20] sm:$0xff] %v419_v42  ;;  %v421_v48 = vadd.f32 %v413_v41, %v397_v47  ;;  %v398_v49 = vsel %vm390_vm7, %v380_v44, 0.0 }
  0x82   : > { %428 = vst [vmem:[%s985_s7 + $0x28] sm:$0xff] %v420_v46  ;;  %v422_v50 = vadd.f32 %v414_v45, %v398_v49 }
  0x83   : > { %429 = vst [vmem:[%s985_s7 + $0x30] sm:$0xff] %v421_v48 }
  0x84   : > { %430 = vst [vmem:[%s985_s7 + $0x38] sm:$0xff] %v422_v50 }
  0x85 PF: > { %s581_s20 = sshll.u32 %s829_s14, 10  ;;  %s445_s18 = sshll.u32 %s985_s7, 4  ;;  %s1081_s18 = int_to_ptr.vmem [resolvable:$true] %s445_s18 }
  0x86   : > { %s1078_s17 = scalar_lea.hbm %s1139_s2, %s581_s20  ;;  %s1085_s22 = scalar_lea.sflag [#allocation4], %s237_s5 }
  0x87   : > { %s726_s23 = scalar_lea.vmem %s1081_s18, 1024  ;;  %s846_s14 = smov [#allocation7]  }
  0x88   : > { %p727_p3 = scmp.ne.s32.totalorder %s1081_s18, %s726_s23  ;;  %s730_s27 = sshll.u32 %s846_s14, 4  ;;  %s731_s27 = int_to_ptr.vmem [resolvable:$false] %s730_s27 }
  0x89   : > { %s732_s30 = scalar_lea.vmem %s731_s27, 2048  ;;  %p733_p7 = scmp.lt.s32.totalorder %s1081_s18, %s731_s27 }
  0x8a   : > { %p728_p5 = pnand %p727_p3, %p928_p12  ;;  %p734_p8 = scmp.lt.s32.totalorder %s732_s30, %s726_s23 }
  0x8c   : > { %p729_p4 = pneg %p728_p5  ;;  %p735_p9 = por %p734_p8, %p733_p7 }
  0x8e   : > { %p736_p10 = pnand %p735_p9, %p729_p4 }
  0x90   : > { %739 = shalt.err (!%p736_p10)
}
  0x91   : > { %s740_s3 = scalar_lea.hbm %s1078_s17, 1024  ;;  %s744_s5 = scalar_lea.hbm %s1139_s2, 2048 }
  0x92   : > { %p741_p11 = scmp.ne.s32.totalorder %s1078_s17, %s740_s3  ;;  %p745_p6 = scmp.lt.u32.totalorder %s1078_s17, %s1139_s2 }
  0x93   : > { %p746_p2 = scmp.lt.u32.totalorder %s744_s5, %s740_s3  ;;  %p748_p5 = scmp.lt.u32.totalorder %s740_s3, %s1078_s17 }
  0x94   : > { %p742_p0 = pnand %p741_p11, %p928_p12 }
  0x95   : > { %p747_p3 = por %p746_p2, %p745_p6 }
  0x96   : > { %p743_p1 = pneg %p742_p0 }
  0x97   : > { %p749_p4 = por %p748_p5, %p747_p3 }
  0x99   : > { %p750_p7 = pnand %p749_p4, %p743_p1 }
  0x9b   : > { %753 = shalt.err (!%p750_p7)
}
  0x9c   : > { %s847_s21 = smov 128   ;;  %s848_s8 = smov 8  }
  0x9d   : > { %584 = dma.vmem_to_hbm [thread:$0]  (%p928_p12), %s1081_s18, 1024, %s1078_s17, %s1085_s22, %s847_s21, %s847_s21, %s848_s8  }
  0x9e PF: > { %s460_s20 = sand.u32 1, %s809_s9   ;;  %p1145_p8 = scmp.ge.s32.totalorder %s837_s16, 2 }
  0x9f   : > { %s461_s28 = scalar_lea.sflag [#allocation4], %s460_s20 }
  0xa0   : > { %p587_p9 = pnand %p1145_p8, %p932_p13 }
  0xa2   : > { %799 = dma.done.wait (!%p587_p9), %s461_s28, 1024  }
  0xa3   : > { %801 = vsyncadd (!%p587_p9), %s461_s28, 4294966272  ;;  %s21_s16 = sadd.s32 1, %s837_s16   ;;  %s1146_s9 = smov %s813_s10 }
  0xa4   : > { %p18_p10 = scmp.ge.s32.totalorder %s21_s16, 4   ;;  %s1147_s10 = smov %s817_s11 }
  0xa5   : > { %s1148_s11 = smov %s922_s24  ;;  %s1149_s12 = smov %s825_s13 }
  0xa6   : > { %s1127_s13 = smov 0   ;;  %s1150_s14 = smov %s833_s15 }
  0xa7   : > { %s1151_s15 = smov %s1153_s19  ;;  %20 = sbr.rel (!%p18_p10) target bundleno = 9 (0x9), region = 98 }
  0xae   :  { %466 = vsyncpa [#allocation3], 1 }
  0xaf   :  { %468 = vsyncpa [#allocation3 + $0x1], 1 }
  0xb0   :  { %469 = vsyncpa [#allocation6], 1 }
  0xb1   :  { %471 = vsyncpa [#allocation6 + $0x1], 1 }
  0xb2   :  { %472 = vsyncpa [#allocation4], 1 }
  0xb3   :  { %474 = vsyncpa [#allocation4 + $0x1], 1 }

</bundles_post_ra>
